<compile_context>
chip_gen: v7x
topology: tpu7x:2x2x1
jax: 0.10.0
libtpu: 0.0.40
codegen_flags: <defaults>
</compile_context>

<pallas_src>
import jax
import jax.numpy as jnp
from jax import lax
from jax.experimental import pallas as pl
from jax.experimental.pallas import tpu as pltpu


# ---------------------------------------------------------------------------
# small helpers
# ---------------------------------------------------------------------------

def _round_up(x, m):
    return ((x + m - 1) // m) * m


def _sublane_packing(dtype):
    # rows per 32-bit sublane group: 8 for f32, 16 for bf16, 32 for int8/fp8
    return max(8, 32 // jnp.dtype(dtype).itemsize)


def _physical_vmem_bytes():
    try:
        return int(pltpu.get_tpu_info().vmem_capacity_bytes)
    except Exception:
        return 64 * 1024 * 1024   # conservative fallback (v7x per-TC VMEM)


def _supports_pipeline_mode():
    try:
        pl.BlockSpec((8, 128), lambda j, i: (0, j), pipeline_mode=pl.Buffered(1))
        return True
    except Exception:
        return False


def _dot_precision(dtype):
    # f32 activations: explicit HIGHEST so results match the f32 reference.
    # bf16 (and narrower): native MXU path, default precision.
    return lax.Precision.HIGHEST if jnp.dtype(dtype) == jnp.float32 else None


def _dequant(w_f32, qp_ref):
    # Matches Quantize.forward: round((w - min) / (s + 1e-10)) * s + min,
    # with the divide replaced by the pre-hoisted reciprocal inv_s.
    w_min = qp_ref[0]
    s = qp_ref[1]
    inv_s = qp_ref[2]
    return jnp.round((w_f32 - w_min) * inv_s) * s + w_min


# ---------------------------------------------------------------------------
# kernels
# ---------------------------------------------------------------------------

def _make_cached_kernel(has_bias, precision):
    """Column-resident path: grid (n, m), dequantized column cached in VMEM."""

    def body(qp_ref, x_ref, w_ref, b_ref, o_ref, wq_ref):
        # Refresh the dequantized column only when entering a new output
        # column (first m-step); all later m-steps reuse the cache.
        @pl.when(pl.program_id(1) == 0)
        def _():
            wq_ref[...] = _dequant(w_ref[...].astype(jnp.float32),
                                   qp_ref).astype(wq_ref.dtype)

        y = jnp.dot(x_ref[...], wq_ref[...],
                    preferred_element_type=jnp.float32, precision=precision)
        if b_ref is not None:
            y = y + b_ref[...]
        o_ref[...] = y.astype(o_ref.dtype)

    if has_bias:
        def kernel(qp_ref, x_ref, w_ref, b_ref, o_ref, wq_ref):
            body(qp_ref, x_ref, w_ref, b_ref, o_ref, wq_ref)
    else:
        def kernel(qp_ref, x_ref, w_ref, o_ref, wq_ref):
            body(qp_ref, x_ref, w_ref, None, o_ref, wq_ref)
    return kernel


def _make_ktiled_kernel(has_bias, precision):
    """K-tiled path: grid (n, m, k) with an f32 accumulator scratch."""

    def body(qp_ref, x_ref, w_ref, b_ref, o_ref, acc_ref):
        k = pl.program_id(2)

        @pl.when(k == 0)
        def _():
            acc_ref[...] = jnp.zeros_like(acc_ref)

        w_q = _dequant(w_ref[...].astype(jnp.float32),
                       qp_ref).astype(x_ref.dtype)
        acc_ref[...] += jnp.dot(x_ref[...], w_q,
                                preferred_element_type=jnp.float32,
                                precision=precision)

        @pl.when(k == pl.num_programs(2) - 1)
        def _():
            y = acc_ref[...]
            if b_ref is not None:
                y = y + b_ref[...]
            o_ref[...] = y.astype(o_ref.dtype)

    if has_bias:
        def kernel(qp_ref, x_ref, w_ref, b_ref, o_ref, acc_ref):
            body(qp_ref, x_ref, w_ref, b_ref, o_ref, acc_ref)
    else:
        def kernel(qp_ref, x_ref, w_ref, o_ref, acc_ref):
            body(qp_ref, x_ref, w_ref, None, o_ref, acc_ref)
    return kernel


# ---------------------------------------------------------------------------
# VMEM estimators & tile selection
# ---------------------------------------------------------------------------

def _est_cached(tm, tn, K, xb, wb, cb, ob, w_nbuf):
    return (2 * tm * K * xb            # x row block (double-buffered)
            + w_nbuf * K * tn * wb     # raw weight column
            + K * tn * cb              # dequantized column cache (scratch)
            + 2 * tm * tn * ob         # output tile (double-buffered)
            + 2 * tn * 4)              # bias tile


def _est_ktiled(tm, tn, tk, xb, wb, cb, ob):
    return (2 * tm * tk * xb
            + 2 * tk * tn * wb
            + tk * tn * (4 + cb)       # f32 dequant temp + cast copy
            + tm * tn * 4              # f32 accumulator scratch
            + 2 * tm * tn * ob
            + 2 * tn * 4)


def _tn_candidates(n_pad, tn_req):
    cap = max(128, (min(tn_req, n_pad) // 128) * 128)
    cands = [t for t in range(cap, 127, -128) if n_pad % t == 0]
    return cands or [128]


def _tm_candidates(m_rows, tm_req, packing):
    cap = _round_up(min(max(tm_req, packing), m_rows), packing)
    cands = []
    t = cap
    while t >= packing:
        cands.append(t)
        if t == packing:
            break
        t = max(packing, _round_up(t // 2, packing))
    return cands


# ---------------------------------------------------------------------------
# wrapper
# ---------------------------------------------------------------------------

def qlinear(x, weight, bias, bits, *, tile_m=256, tile_n=512, tile_k=None):
    """Fake-quantized linear: y = x @ quantize(W)^T + bias (QLinear.forward).

    x: [..., in_features]; weight: [out_features, in_features];
    bias: [out_features] or None.  Pass bf16 `x` to feed the MXU natively.
    tile_k forces the K-tiled accumulator path (also auto-selected when the
    column-resident working set would not fit the per-generation VMEM budget).
    """
    out_features, in_features = weight.shape
    lead_shape = x.shape[:-1]
    out_dtype = x.dtype
    compute_dtype = x.dtype

    xb = cb = jnp.dtype(compute_dtype).itemsize
    wb = jnp.dtype(weight.dtype).itemsize
    ob = jnp.dtype(out_dtype).itemsize
    packing = _sublane_packing(compute_dtype)

    x2d = x.reshape(-1, in_features)
    M = x2d.shape[0]

    # ---- global fake-quant parameters (one reduction pass, hoisted) ---------
    w_f32 = weight.astype(jnp.float32)
    w_min = jnp.min(w_f32)
    w_max = jnp.max(w_f32)
    s = (w_max - w_min) / (2.0 ** bits - 1.0)
    inv_s = 1.0 / (s + 1e-10)
    qparams = jnp.stack([w_min, s, inv_s]).astype(jnp.float32)   # (3,) -> SMEM

    # ---- weight transposed to [K, N]; N padded to a lane-dense multiple -----
    n_pad = _round_up(out_features, 128)
    w_t = jnp.transpose(weight)                                  # (K, N)
    if n_pad != out_features:
        w_t = jnp.pad(w_t, ((0, 0), (0, n_pad - out_features)))
    b_row = None
    if bias is not None:
        b_row = bias.astype(jnp.float32).reshape(1, out_features)
        if n_pad != out_features:
            b_row = jnp.pad(b_row, ((0, 0), (0, n_pad - out_features)))

    # ---- rows: pad only to the sublane packing (cheap), grid uses cdiv ------
    m_rows = _round_up(max(M, 1), packing)
    if m_rows != M:
        x2d = jnp.pad(x2d, ((0, m_rows - M), (0, 0)))
    if x2d.dtype != compute_dtype:
        x2d = x2d.astype(compute_dtype)

    # ---- generation-aware VMEM budget ----------------------------------------
    physical = _physical_vmem_bytes()
    vmem_cap = physical - physical // 8        # headroom below physical VMEM
    budget = int(vmem_cap * 0.8)

    has_pipeline_mode = _supports_pipeline_mode()
    w_nbuf = 1 if has_pipeline_mode else 2

    tn_opts = _tn_candidates(n_pad, tile_n)
    tm_opts = _tm_candidates(m_rows, tile_m, packing)

    tk_eff = None
    if tile_k is not None and _round_up(tile_k, 128) < in_features:
        tk_eff = _round_up(tile_k, 128)

    precision = _dot_precision(compute_dtype)
    k_pad = in_features

    choice = None
    if tk_eff is None:
        best = None
        for tn in tn_opts:                    # prefer large, lane-dense tn
            for tm in tm_opts:                # and the largest tm that fits
                if _est_cached(tm, tn, in_features, xb, wb, cb, ob, w_nbuf) <= budget:
                    if best is None or tm * tn > best[0] * best[1]:
                        best = (tm, tn)
                    break
        choice = best

    if choice is not None:
        # ---------------- column-resident path --------------------------------
        tm_eff, tn_eff = choice
        grid = (n_pad // tn_eff, pl.cdiv(m_rows, tm_eff))
        w_idx = lambda j, i: (0, j)
        if has_pipeline_mode:
            # block index constant across m -> single buffer halves footprint
            w_spec = pl.BlockSpec((in_features, tn_eff), w_idx,
                                  pipeline_mode=pl.Buffered(1))
        else:
            w_spec = pl.BlockSpec((in_features, tn_eff), w_idx)

        in_specs = [
            pl.BlockSpec(memory_space=pltpu.MemorySpace.SMEM),          # qparams
            pl.BlockSpec((tm_eff, in_features), lambda j, i: (i, 0)),   # x rows
            w_spec,                                                     # W^T col
        ]
        operands = [qparams, x2d, w_t]
        if b_row is not None:
            in_specs.append(pl.BlockSpec((1, tn_eff), lambda j, i: (0, j)))
            operands.append(b_row)
        out_spec = pl.BlockSpec((tm_eff, tn_eff), lambda j, i: (i, j))
        scratch = [pltpu.VMEM((in_features, tn_eff), compute_dtype)]    # wq cache
        kernel = _make_cached_kernel(b_row is not None, precision)
        dims = ("parallel", "arbitrary")     # scratch carries state across m
        est = _est_cached(tm_eff, tn_eff, in_features, xb, wb, cb, ob, w_nbuf)
    else:
        # ---------------- K-tiled path (bounded VMEM for huge in_features) ----
        sel = None
        for tn in tn_opts:
            for tm in tm_opts:
                if tk_eff is not None:
                    if _est_ktiled(tm, tn, tk_eff, xb, wb, cb, ob) <= budget:
                        sel = (tm, tn, tk_eff)
                else:
                    for tk in range(2048, 127, -128):
                        if _est_ktiled(tm, tn, tk, xb, wb, cb, ob) <= budget:
                            sel = (tm, tn, tk)
                            break
                if sel:
                    break
            if sel:
                break
        if sel is None:
            sel = (tm_opts[-1], 128, tk_eff if tk_eff is not None else 128)
        tm_eff, tn_eff, tk_eff = sel

        k_pad = _round_up(in_features, tk_eff)
        if k_pad != in_features:
            # zero-pad K in x so padded-K contributions are exactly zero
            x2d = jnp.pad(x2d, ((0, 0), (0, k_pad - in_features)))
            w_t = jnp.pad(w_t, ((0, k_pad - in_features), (0, 0)))

        grid = (n_pad // tn_eff, pl.cdiv(m_rows, tm_eff), k_pad // tk_eff)
        in_specs = [
            pl.BlockSpec(memory_space=pltpu.MemorySpace.SMEM),
            pl.BlockSpec((tm_eff, tk_eff), lambda j, i, k: (i, k)),
            pl.BlockSpec((tk_eff, tn_eff), lambda j, i, k: (k, j)),
        ]
        operands = [qparams, x2d, w_t]
        if b_row is not None:
            in_specs.append(pl.BlockSpec((1, tn_eff), lambda j, i, k: (0, j)))
            operands.append(b_row)
        out_spec = pl.BlockSpec((tm_eff, tn_eff), lambda j, i, k: (i, j))
        scratch = [pltpu.VMEM((tm_eff, tn_eff), jnp.float32)]            # acc
        kernel = _make_ktiled_kernel(b_row is not None, precision)
        dims = ("parallel", "parallel", "arbitrary")
        est = _est_ktiled(tm_eff, tn_eff, tk_eff, xb, wb, cb, ob)

    # ---- scoped VMEM limit: always set, per-generation capped -----------------
    vmem_limit = min(max(int(est * 1.25), 32 * 1024 * 1024), vmem_cap)
    if vmem_limit < est:
        vmem_limit = min(int(est * 1.1) + (1 << 20), physical)

    out2d = pl.pallas_call(
        kernel,
        out_shape=jax.ShapeDtypeStruct((m_rows, n_pad), out_dtype),
        grid_spec=pltpu.PrefetchScalarGridSpec(
            num_scalar_prefetch=0,
            grid=grid,
            in_specs=in_specs,
            out_specs=out_spec,
            scratch_shapes=scratch,
        ),
        compiler_params=pltpu.CompilerParams(
            dimension_semantics=dims,
            vmem_limit_bytes=int(vmem_limit),
        ),
    )(*operands)

    out2d = out2d[:M, :out_features]
    return out2d.reshape(*lead_shape, out_features)


# ---------------------------------------------------------------------------
# pure-JAX reference (same reciprocal formulation as the kernel)
# ---------------------------------------------------------------------------

def _reference_qlinear(x, weight, bias, bits):
    w = weight.astype(jnp.float32)
    w_min = jnp.min(w)
    w_max = jnp.max(w)
    s = (w_max - w_min) / (2.0 ** bits - 1.0)
    inv_s = 1.0 / (s + 1e-10)
    w_q = jnp.round((w - w_min) * inv_s) * s + w_min
    y = jnp.einsum("...k,nk->...n", x.astype(jnp.float32), w_q,
                   precision=jax.lax.Precision.HIGHEST)
    if bias is not None:
        y = y + bias.astype(jnp.float32)
    return y


if __name__ == "__main__":
    key = jax.random.PRNGKey(0)
    keys = jax.random.split(key, 10)

    # Test 1: module-typical small shape, bias, N < 128 (exercises N padding).
    batch, seq, in_f, out_f, bits = 2, 8, 32, 16, 4
    x = jax.random.normal(keys[0], (batch, seq, in_f), dtype=jnp.float32)
    w = jax.random.normal(keys[1], (out_f, in_f), dtype=jnp.float32) * 0.1
    b = jax.random.normal(keys[2], (out_f,), dtype=jnp.float32) * 0.01
    out = jax.block_until_ready(qlinear(x, w, b, bits))
    ref = _reference_qlinear(x, w, b, bits)
    assert out.shape == (batch, seq, out_f)
    assert jnp.allclose(out, ref, atol=1e-5, rtol=1e-5), "mismatch (bias case)"

    # Test 2: no bias, M not a multiple of the sublane packing (row padding).
    x2 = jax.random.normal(keys[3], (3, 5, in_f), dtype=jnp.float32)
    out2 = jax.block_until_ready(qlinear(x2, w, None, 3))
    ref2 = _reference_qlinear(x2, w, None, 3)
    assert out2.shape == (3, 5, out_f)
    assert jnp.allclose(out2, ref2, atol=1e-5, rtol=1e-5), "mismatch (no-bias case)"

    # Test 3: multi-tile grid over both M and N (column-resident path).
    in3, out3 = 64, 256
    x3 = jax.random.normal(keys[4], (6, 8, in3), dtype=jnp.float32)
    w3 = jax.random.normal(keys[5], (out3, in3), dtype=jnp.float32) * 0.1
    b3 = jax.random.normal(keys[6], (out3,), dtype=jnp.float32) * 0.01
    out3_a = jax.block_until_ready(qlinear(x3, w3, b3, 4, tile_m=16, tile_n=128))
    ref3 = _reference_qlinear(x3, w3, b3, 4)
    assert out3_a.shape == (6, 8, out3)
    assert jnp.allclose(out3_a, ref3, atol=1e-4, rtol=1e-4), "mismatch (tiled case)"

    # Test 4: forced K tiling (k grid axis + f32 accumulator scratch path).
    in4, out4 = 512, 256
    x4 = jax.random.normal(keys[7], (2, 8, in4), dtype=jnp.float32)
    w4 = jax.random.normal(keys[8], (out4, in4), dtype=jnp.float32) * 0.05
    b4 = jax.random.normal(keys[9], (out4,), dtype=jnp.float32) * 0.01
    out4_a = jax.block_until_ready(qlinear(x4, w4, b4, 4, tile_k=128))
    ref4 = _reference_qlinear(x4, w4, b4, 4)
    assert out4_a.shape == (2, 8, out4)
    assert jnp.allclose(out4_a, ref4, atol=1e-4, rtol=1e-4), "mismatch (K-tiled case)"

    # Test 5: bf16 activations feed the MXU natively (16-row sublane packing).
    x5 = x4.astype(jnp.bfloat16)
    out5 = jax.block_until_ready(qlinear(x5, w4, b4, 8))
    ref5 = _reference_qlinear(x4, w4, b4, 8)
    assert out5.dtype == jnp.bfloat16
    assert jnp.allclose(out5.astype(jnp.float32), ref5, atol=0.1, rtol=0.1), \
        "mismatch (bf16 case)"

    print("KERNEL_OK")
</pallas_src>

<mosaic_0001>
module attributes {stable_mosaic.version = 11 : i64} {
  func.func @kernel(%arg0: i32, %arg1: i32, %arg2: memref<3xf32, #tpu.memory_space<smem>>, %arg3: memref<16x32xf32, #tpu.memory_space<vmem>>, %arg4: memref<32x128xf32, #tpu.memory_space<vmem>>, %arg5: memref<1x128xf32, #tpu.memory_space<vmem>>, %arg6: memref<16x128xf32, #tpu.memory_space<vmem>>, %arg7: memref<32x128xf32, #tpu.memory_space<vmem>>) attributes {dimension_semantics = [#tpu.dimension_semantics<parallel>, #tpu.dimension_semantics<arbitrary>], iteration_bounds = array<i64: 1, 1>, scalar_prefetch = 0 : i64, scratch_operands = 1 : i64, tpu.core_type = #tpu.core_type<tc>, window_params = [{transform_indices = @transform_0, window_bounds = array<i64: 3>}, {transform_indices = @transform_1, window_bounds = array<i64: 16, 32>}, {pipeline_mode = #tpu.pipeline_mode<synchronous>, transform_indices = @transform_2, window_bounds = array<i64: 32, 128>}, {transform_indices = @transform_3, window_bounds = array<i64: 1, 128>}, {transform_indices = @transform_4, window_bounds = array<i64: 16, 128>}]} {
    %c0_i32 = arith.constant 0 : i32
    %0 = arith.cmpi eq, %arg1, %c0_i32 : i32
    %1 = arith.extui %0 : i1 to i32
    %c0_i32_0 = arith.constant 0 : i32
    %2 = arith.cmpi ne, %1, %c0_i32_0 : i32
    scf.if %2 {
      %c0_8 = arith.constant 0 : index
      %c0_9 = arith.constant 0 : index
      %10 = vector.load %arg4[%c0_8, %c0_9] : memref<32x128xf32, #tpu.memory_space<vmem>>, vector<32x128xf32>
      %c0_10 = arith.constant 0 : index
      %11 = memref.load %arg2[%c0_10] : memref<3xf32, #tpu.memory_space<smem>>
      %c1 = arith.constant 1 : index
      %12 = memref.load %arg2[%c1] : memref<3xf32, #tpu.memory_space<smem>>
      %c2 = arith.constant 2 : index
      %13 = memref.load %arg2[%c2] : memref<3xf32, #tpu.memory_space<smem>>
      %14 = vector.broadcast %11 : f32 to vector<32x128xf32>
      %15 = arith.subf %10, %14 : vector<32x128xf32>
      %16 = vector.broadcast %13 : f32 to vector<32x128xf32>
      %17 = arith.mulf %15, %16 : vector<32x128xf32>
      %18 = math.roundeven %17 : vector<32x128xf32>
      %19 = vector.broadcast %12 : f32 to vector<32x128xf32>
      %20 = arith.mulf %18, %19 : vector<32x128xf32>
      %21 = vector.broadcast %11 : f32 to vector<32x128xf32>
      %22 = arith.addf %20, %21 : vector<32x128xf32>
      %c0_11 = arith.constant 0 : index
      %c0_12 = arith.constant 0 : index
      %23 = vector.load %arg7[%c0_11, %c0_12] : memref<32x128xf32, #tpu.memory_space<vmem>>, vector<32x128xf32>
      tpu.vector_store %arg7[%c0_11, %c0_12], %22 {strides = array<i32>} : memref<32x128xf32, #tpu.memory_space<vmem>>, vector<32x128xf32>,
    } else {
    }
    %c0 = arith.constant 0 : index
    %c0_1 = arith.constant 0 : index
    %3 = vector.load %arg3[%c0, %c0_1] : memref<16x32xf32, #tpu.memory_space<vmem>>, vector<16x32xf32>
    %c0_2 = arith.constant 0 : index
    %c0_3 = arith.constant 0 : index
    %4 = vector.load %arg7[%c0_2, %c0_3] : memref<32x128xf32, #tpu.memory_space<vmem>>, vector<32x128xf32>
    %cst = arith.constant dense<0.000000e+00> : vector<16x128xf32>
    %5 = tpu.matmul %3, %4, %cst {dimension_numbers = #tpu.dot_dimension_numbers<[1], [0], [0], [1], [0, 0, 1, 1], [], []>, precision = #tpu.contract_precision<fp32>} : vector<16x32xf32>, vector<32x128xf32>, vector<16x128xf32> -> vector<16x128xf32>
    %c0_4 = arith.constant 0 : index
    %c0_5 = arith.constant 0 : index
    %6 = vector.load %arg5[%c0_4, %c0_5] : memref<1x128xf32, #tpu.memory_space<vmem>>, vector<1x128xf32>
    %7 = vector.broadcast %6 : vector<1x128xf32> to vector<16x128xf32>
    %8 = arith.addf %5, %7 : vector<16x128xf32>
    %c0_6 = arith.constant 0 : index
    %c0_7 = arith.constant 0 : index
    %9 = vector.load %arg6[%c0_6, %c0_7] : memref<16x128xf32, #tpu.memory_space<vmem>>, vector<16x128xf32>
    tpu.vector_store %arg6[%c0_6, %c0_7], %8 {strides = array<i32>} : memref<16x128xf32, #tpu.memory_space<vmem>>, vector<16x128xf32>,
    return
  }
  func.func @transform_0(%arg0: i32, %arg1: i32) -> i32 {
    %c0_i32 = arith.constant 0 : i32
    %c0_i32_0 = arith.constant 0 : i32
    return %c0_i32 : i32
  }
  func.func @transform_1(%arg0: i32, %arg1: i32) -> (i32, i32) {
    %c0_i32 = arith.constant 0 : i32
    %c0_i32_0 = arith.constant 0 : i32
    return %arg1, %c0_i32 : i32, i32
  }
  func.func @transform_2(%arg0: i32, %arg1: i32) -> (i32, i32) {
    %c0_i32 = arith.constant 0 : i32
    %c0_i32_0 = arith.constant 0 : i32
    return %c0_i32, %arg0 : i32, i32
  }
  func.func @transform_3(%arg0: i32, %arg1: i32) -> (i32, i32) {
    %c0_i32 = arith.constant 0 : i32
    %c0_i32_0 = arith.constant 0 : i32
    return %c0_i32, %arg0 : i32, i32
  }
  func.func @transform_4(%arg0: i32, %arg1: i32) -> (i32, i32) {
    %c0_i32 = arith.constant 0 : i32
    return %arg1, %arg0 : i32, i32
  }
}

</mosaic_0001>

<bundles_post_ra>
// kernel: tpu_custom_call.1
= control target key start
LH: loop header
LB: loop body
LE: loop exit
PB: predicated region body
PF: predicated region fallthrough
CT: control target
= control target key end

     0   :  { %9 = vsyncpa [#allocation6], 0  ;;  %s1036_s0 = inlined_call_operand.hbm [shape: f32[3], index: 0, kind: input, shape index: {}]   ;;  %s1037_s1 = inlined_call_operand.hbm [shape: f32[16,32], index: 1, kind: input, shape index: {}]   ;;  %s1038_s2 = inlined_call_operand.hbm [shape: f32[32,128], index: 2, kind: input, shape index: {}]   ;;  %s1039_s3 = inlined_call_operand.vmem [shape: f32[1,128], index: 3, kind: input, shape index: {}]   ;;  %s1040_s4 = inlined_call_operand.hbm [shape: f32[16,128], index: 4, kind: output, shape index: {}]  }
   0x1   :  { %10 = vsyncpa [#allocation4], 0 }
   0x2   :  { %11 = vsyncpa [#allocation9], 0 }
   0x3   :  { %12 = vsyncpa [#allocation5], 0  ;;  %s839_s17 = scalar_lea.hbm %s1036_s0, 16 }
   0x4   :  { %p840_p0 = scmp.ne.s32.totalorder %s1036_s0, %s839_s17  ;;  %p843_p1 = scmp.lt.u32.totalorder %s839_s17, %s1036_s0 }
   0x6   :  { %p845_p2 = pnand %p843_p1, %p840_p0 }
   0x8   :  { %848 = shalt.err (!%p845_p2)
}
   0x9   :  { %s923_s22 = smov [#allocation3]   ;;  %s924_s25 = smov [#allocation7]  }
   0xa   :  { %20 = dma.hbm_to_smem %s1036_s0, 16, %s923_s22, [#allocation6]  }
   0xb   :  { %s26_s26 = sshll.u32 %s924_s25, 4  ;;  %s849_s29 = scalar_lea.hbm %s1037_s1, 256  ;;  %s27_s26 = int_to_ptr.vmem [resolvable:$true] %s26_s26 }
   0xc   :  { %p850_p3 = scmp.ne.s32.totalorder %s1037_s1, %s849_s29  ;;  %p853_p4 = scmp.lt.u32.totalorder %s849_s29, %s1037_s1 }
   0xe   :  { %p855_p5 = pnand %p853_p4, %p850_p3 }
  0x10   :  { %858 = shalt.err (!%p855_p5)
}
  0x11   :  { %s859_s8 = scalar_lea.vmem %s27_s26, 256  ;;  %p864_p7 = scmp.lt.s32.totalorder %s27_s26, %s27_s26 }
  0x12   :  { %p860_p6 = scmp.ne.s32.totalorder %s27_s26, %s859_s8  ;;  %p865_p8 = scmp.lt.s32.totalorder %s859_s8, %s859_s8 }
  0x14   :  { %p866_p9 = por %p865_p8, %p864_p7 }
  0x16   :  { %p867_p10 = pnand %p866_p9, %p860_p6 }
  0x18   :  { %870 = shalt.err (!%p867_p10)
}
  0x19   :  { %s925_s0 = smov 128   ;;  %s926_s9 = smov 8  }
  0x1a   :  { %32 = dma.hbm_to_vmem [thread:$0]  %s1037_s1, 256, %s27_s26, [#allocation4], %s925_s0, %s925_s0, %s926_s9  }
  0x1b   :  { %s927_s12 = smov [#allocation8]   ;;  %s871_s16 = scalar_lea.hbm %s1038_s2, 512 }
  0x1c   :  { %s38_s13 = sshll.u32 %s927_s12, 4  ;;  %p872_p11 = scmp.ne.s32.totalorder %s1038_s2, %s871_s16  ;;  %s39_s13 = int_to_ptr.vmem [resolvable:$true] %s38_s13 }
  0x1d   :  { %p875_p12 = scmp.lt.u32.totalorder %s871_s16, %s1038_s2 }
  0x1f   :  { %p877_p13 = pnand %p875_p12, %p872_p11 }
  0x21   :  { %880 = shalt.err (!%p877_p13)
}
  0x22   :  { %s881_s21 = scalar_lea.vmem %s39_s13, 512  ;;  %p886_p1 = scmp.lt.s32.totalorder %s39_s13, %s39_s13 }
  0x23   :  { %p882_p0 = scmp.ne.s32.totalorder %s39_s13, %s881_s21  ;;  %p887_p2 = scmp.lt.s32.totalorder %s881_s21, %s881_s21 }
  0x25   :  { %p888_p3 = por %p887_p2, %p886_p1 }
  0x27   :  { %p889_p4 = pnand %p888_p3, %p882_p0 }
  0x29   :  { %892 = shalt.err (!%p889_p4)
}
  0x2a   :  { %44 = dma.hbm_to_vmem [thread:$0]  %s1038_s2, 512, %s39_s13, [#allocation9], %s925_s0, %s925_s0, %s926_s9  }
  0x2b   :  { %915 = dma.done.wait [#allocation6], 16  }
  0x2c   :  { %916 = vsyncadd [#allocation6], 4294967280 }
  0x2d   :  { %917 = dma.done.wait [#allocation4], 256  }
  0x2e   :  { %918 = vsyncadd [#allocation4], 4294967040 }
  0x2f   :  { %919 = dma.done.wait [#allocation9], 512  }
  0x30   :  { %920 = vsyncadd [#allocation9], 4294966784 }
  0x31   :  { %56 = sfence }
  0x32   :  { %s65_s23 = sld [smem:[#allocation3]]  ;;  %s665_s24 = sld [smem:[#allocation3 + $0x2]]  ;;  %v95_v0 = vld [vmem:[#allocation7] sm:$0xff]  ;;  %vm108_vm0 = vcmask 261120   ;;  %v96_v2 = vld [vmem:[#allocation7 + $0x8] sm:$0xff]  ;;  %v61_v4 = vld [vmem:[#allocation8] sm:$0xff] }
  0x33   :  { %s664_s25 = sld [smem:[#allocation3 + $0x1]]  ;;  %v110_v1 = vsel %vm108_vm0, %v95_v0, 0  ;;  %v62_v5 = vld [vmem:[#allocation8 + $0x8] sm:$0xff]  ;;  %v63_v6 = vld [vmem:[#allocation8 + $0x10] sm:$0xff]  ;;  %v64_v7 = vld [vmem:[#allocation8 + $0x18] sm:$0xff]  ;;  %v113_v10 = vsel %vm108_vm0, %v96_v2, 0 }
  0x34   :  { %v996_v3 = vand.u32 4294901760, %v110_v1  ;;  %v1002_v20 = vand.u32 4294901760, %v113_v10  ;;  %s928_s27 = smov [#allocation10]  }
  0x35   :  { %s650_s28 = sshll.u32 %s928_s27, 4  ;;  %s651_s28 = int_to_ptr.vmem [resolvable:$true] %s650_s28 }
  0x36   :  { %v999_v8 = vsub.f32 %v110_v1, %v996_v3  ;;  %v1006_v32 = vsub.f32 %v113_v10, %v1002_v20  ;;  %s893_s29 = scalar_lea.vmem %s651_s28, 256  ;;  %p898_p6 = scmp.lt.s32.totalorder %s651_s28, %s651_s28 }
  0x37   :  { %p894_p5 = scmp.ne.s32.totalorder %s651_s28, %s893_s29  ;;  %p899_p7 = scmp.lt.s32.totalorder %s893_s29, %s893_s29 }
  0x38   :  { %v68_v9 = vstv %s65_s23  ;;  %v73_v13 = vstv %s665_s24  ;;  %v186_v16 = vand.u32 4294901760, %v999_v8  ;;  %v196_v41 = vand.u32 4294901760, %v1006_v32 }
  0x39   :  { %v69_v11 = vsub.f32 %v61_v4, %v68_v9  ;;  %v70_v12 = vsub.f32 %v62_v5, %v68_v9  ;;  %v71_v14 = vsub.f32 %v63_v6, %v68_v9  ;;  %v72_v15 = vsub.f32 %v64_v7, %v68_v9  ;;  %v666_v6 = vld [vmem:[%s1039_s3] ss:$0 sm:$0xff]  ;;  %p900_p8 = por %p899_p7, %p898_p6 }
  0x3a   :  { %v82_v21 = vstv %s664_s25  ;;  %v187_v23 = vsub.f32 %v999_v8, %v186_v16  ;;  %744 = vmatprep.mubr.f32.mxu0 %v186_v16  ;;  %v197_v49 = vsub.f32 %v1006_v32, %v196_v41 }
  0x3b   :  { %v74_v17 = vmul.f32 %v73_v13, %v69_v11  ;;  %v75_v18 = vmul.f32 %v73_v13, %v70_v12  ;;  %v76_v19 = vmul.f32 %v73_v13, %v71_v14  ;;  %v77_v22 = vmul.f32 %v73_v13, %v72_v15  ;;  %p901_p9 = pnand %p900_p8, %p894_p5 }
  0x3c   :  { %v188_v28 = vand.u32 4294901760, %v187_v23  ;;  %v198_v59 = vand.u32 4294901760, %v197_v49 }
  0x3d   :  { %v829_v24 = vround.rtne.f32 %v74_v17  ;;  %v830_v25 = vround.rtne.f32 %v75_v18  ;;  %v831_v26 = vround.rtne.f32 %v76_v19  ;;  %v832_v27 = vround.rtne.f32 %v77_v22 }
  0x3e   :  { %711 = vmatprep.mubr.f32.mxu1 %v188_v28 }
  0x3f   :  { %v83_v29 = vmul.f32 %v829_v24, %v82_v21  ;;  %v84_v30 = vmul.f32 %v830_v25, %v82_v21  ;;  %v85_v31 = vmul.f32 %v831_v26, %v82_v21  ;;  %v86_v33 = vmul.f32 %v832_v27, %v82_v21 }
  0x41   :  { %v87_v34 = vadd.f32 %v83_v29, %v68_v9  ;;  %v88_v35 = vadd.f32 %v84_v30, %v68_v9  ;;  %v89_v36 = vadd.f32 %v85_v31, %v68_v9  ;;  %v90_v37 = vadd.f32 %v86_v33, %v68_v9 }
  0x43   :  { %v116_v38 = vand.u32 4294901760, %v87_v34  ;;  %v119_v39 = vand.u32 4294901760, %v88_v35  ;;  %v122_v40 = vand.u32 4294901760, %v89_v36  ;;  %v125_v42 = vand.u32 4294901760, %v90_v37 }
  0x45   :  { %v769_v43 = vpack.c.bf16 %v119_v39, %v116_v38  ;;  %v206_v44 = vsub.f32 %v87_v34, %v116_v38  ;;  %v213_v45 = vsub.f32 %v88_v35, %v119_v39  ;;  %v220_v46 = vsub.f32 %v89_v36, %v122_v40 }
  0x46   :  { %v773_v47 = vpack.c.bf16 %v125_v42, %v122_v40  ;;  %v227_v48 = vsub.f32 %v90_v37, %v125_v42 }
  0x47   :  { %770 = vmatprep.subr.bf16.mxu1 %v769_v43  ;;  %794 = vmatprep.subr.bf16.mxu0 %v769_v43  ;;  %v207_v50 = vand.u32 4294901760, %v206_v44  ;;  %v214_v51 = vand.u32 4294901760, %v213_v45  ;;  %v221_v52 = vand.u32 4294901760, %v220_v46  ;;  %v785_v4 = vpack.c.bf16 %v213_v45, %v206_v44 }
  0x48   :  { %772 = vmatpush3.bf16.msra.mxu1 %v769_v43  ;;  %796 = vmatpush3.bf16.msra.mxu0 %v769_v43  ;;  %v228_v53 = vand.u32 4294901760, %v227_v48  ;;  %v789_v5 = vpack.c.bf16 %v227_v48, %v220_v46 }
  0x49   :  { %774 = vmatprep.subr.bf16.mxu1 %v773_v47  ;;  %798 = vmatprep.subr.bf16.mxu0 %v773_v47  ;;  %v208_v54 = vsub.f32 %v206_v44, %v207_v50  ;;  %v215_v55 = vsub.f32 %v213_v45, %v214_v51  ;;  %v801_v56 = vpack.c.bf16 %v214_v51, %v207_v50 }
  0x4a   :  { %v222_v57 = vsub.f32 %v220_v46, %v221_v52  ;;  %v229_v58 = vsub.f32 %v227_v48, %v228_v53  ;;  %v805_v2 = vpack.c.bf16 %v228_v53, %v221_v52 }
  0x4b   :  { %v209_v60 = vand.u32 4294901760, %v208_v54  ;;  %v216_v61 = vand.u32 4294901760, %v215_v55 }
  0x4c   :  { %776 = vmatpush3.bf16.msra.mxu1 %v773_v47  ;;  %800 = vmatpush3.bf16.msra.mxu0 %v773_v47  ;;  %v223_v62 = vand.u32 4294901760, %v222_v57  ;;  %v230_v63 = vand.u32 4294901760, %v229_v58 }
  0x4d   :  { %v777_v0 = vpack.c.bf16 %v216_v61, %v209_v60  ;;  %802 = vmatprep.subr.bf16.mxu0 %v801_v56 }
  0x4e   :  { %v781_v1 = vpack.c.bf16 %v230_v63, %v223_v62 }
  0x4f   :  { %712 = vmatmul.mubr.f32.vlgmr.msra.gmra.mrb[0].mxu1 %v198_v59  ;;  %778 = vmatprep.subr.bf16.mxu1 %v777_v0 }
  0x50   :  { %745 = vmatmul.mubr.f32.vlgmr.msra.gmra.mrb[0].mxu0 %v196_v41  ;;  %780 = vmatpush3.bf16.msra.mxu1 %v777_v0 }
  0x51   :  { %804 = vmatpush3.bf16.msra.mxu0 %v801_v56  ;;  %782 = vmatprep.subr.bf16.mxu1 %v781_v1 }
  0x52   :  { %806 = vmatprep.subr.bf16.mxu0 %v805_v2  ;;  %722 = vmatprep.mubr.f32.mxu1 %v996_v3 }
  0x53   :  { %755 = vmatprep.mubr.f32.mxu0 %v996_v3 }
  0x54   :  { %784 = vmatpush3.bf16.msra.mxu1 %v781_v1 }
  0x55   :  { %808 = vmatpush3.bf16.msra.mxu0 %v805_v2  ;;  %786 = vmatprep.subr.bf16.mxu1 %v785_v4 }
  0x56   :  { %810 = vmatprep.subr.bf16.mxu0 %v769_v43 }
  0x57   :  { %723 = vmatmul.mubr.f32.vlgmr.msra.gmra.mrb[0].mxu1 %v1002_v20 }
  0x58   :  { %756 = vmatmul.mubr.f32.vlgmr.msra.gmra.mrb[0].mxu0 %v1002_v20  ;;  %788 = vmatpush3.bf16.msra.mxu1 %v785_v4 }
  0x59   :  { %812 = vmatpush3.bf16.msra.mxu0 %v769_v43  ;;  %790 = vmatprep.subr.bf16.mxu1 %v789_v5 }
  0x5a   :  { %814 = vmatprep.subr.bf16.mxu0 %v773_v47  ;;  %733 = vmatprep.mubr.f32.mxu1 %v999_v8 }
  0x5b   :  { %766 = vmatprep.mubr.f32.mxu0 %v996_v3 }
  0x5c   :  { %792 = vmatpush3.bf16.msra.mxu1 %v789_v5 }
  0x5d   :  { %816 = vmatpush3.bf16.msra.mxu0 %v773_v47 }
  0x5f   :  { %734 = vmatmul.mubr.f32.vlgmr.msra.gmra.mrb[0].mxu1 %v1006_v32 }
  0x60   :  { %767 = vmatmul.mubr.f32.vlgmr.msra.gmra.mrb[0].mxu0 %v1002_v20 }
 0x132   :  { %v735_v7 = vpop.f32.mrb[0].mxu1 }
 0x133   :  { %v817_v9 = vadd.f32 %v735_v7, %v666_v6  ;;  %v768_v10 = vpop.f32.mrb[0].mxu0  ;;  %v377_v11 = vpop.f32.mrb[1].mxu1 }
 0x134   :  { %v819_v12 = vadd.f32 %v666_v6, %v377_v11  ;;  %v633_v8 = vpop.f32.mrb[1].mxu0 }
 0x135   :  { %v818_v13 = vadd.f32 %v817_v9, %v768_v10 }
 0x136   :  { %v820_v3 = vadd.f32 %v819_v12, %v633_v8 }
 0x137   :  { %644 = vst [vmem:[#allocation10 + $0x8] sm:$0xff] %v818_v13 }
 0x138   :  { %643 = vst [vmem:[#allocation10] sm:$0xff] %v820_v3 }
 0x139   :  { %904 = shalt.err (!%p901_p9)
}
 0x13a   :  { %s905_s5 = scalar_lea.hbm %s1040_s4, 256 }
 0x13b   :  { %p906_p10 = scmp.ne.s32.totalorder %s1040_s4, %s905_s5  ;;  %p909_p11 = scmp.lt.u32.totalorder %s905_s5, %s1040_s4 }
 0x13d   :  { %p911_p12 = pnand %p909_p11, %p906_p10 }
 0x13f   :  { %914 = shalt.err (!%p911_p12)
}
 0x140   :  { %656 = dma.vmem_to_hbm [thread:$0]  %s651_s28, 256, %s1040_s4, [#allocation5], %s925_s0, %s925_s0, %s926_s9  }
 0x141   :  { %921 = dma.done.wait [#allocation5], 256  }
 0x142   :  { %922 = vsyncadd [#allocation5], 4294967040 }
 0x143   :  { %660 = vsyncpa [#allocation4], 1 }
 0x144   :  { %661 = vsyncpa [#allocation9], 1 }
 0x145   :  { %662 = vsyncpa [#allocation5], 1 }
 0x146   :  { %663 = vsyncpa [#allocation6], 1 }

</bundles_post_ra>
